<compile_context>
chip_gen: v7x
topology: tpu7x:2x2x1
jax: 0.10.0
libtpu: 0.0.40
codegen_flags: <defaults>
</compile_context>

<pallas_src>
import functools
import math

import jax
import jax.numpy as jnp
from jax.experimental import pallas as pl
from jax.experimental.pallas import tpu as pltpu

_PRIOR_SIGMA = 0.1
_LOG_PRIOR_SIGMA = math.log(_PRIOR_SIGMA)
_HALF_INV_PRIOR_VAR = 0.5 / (_PRIOR_SIGMA * _PRIOR_SIGMA)   # == 50.0


def _round_up(x, m):
    return ((x + m - 1) // m) * m


def _pad2(a, rows, cols, val=0.0):
    r, c = a.shape
    if r == rows and c == cols:
        return a
    return jnp.pad(a, ((0, rows - r), (0, cols - c)), constant_values=val)


def _kl_terms(val, eps, sigma):
    """Elementwise log q(val) - log p(val), prior N(0, 0.1), using
    (val - mu) / sigma == eps. The 0.5*log(2*pi) terms cancel."""
    return (_HALF_INV_PRIOR_VAR * val * val
            - 0.5 * eps * eps
            - jnp.log(sigma)
            + _LOG_PRIOR_SIGMA)


def bayesian_linear_kernel(x_ref, wms_ref, epsw_ref, bms_ref, epsb_ref,
                           y_ref, kl_ref,
                           acc_ref, kl_sc,
                           *, in_features, out_features, mask_kl, matmul_dtype):
    f32 = jnp.float32
    i = pl.program_id(0)                      # batch (M) tile index
    j = pl.program_id(1)                      # output (N) tile index
    k = pl.program_id(2)                      # reduction (K) tile index
    k_last = pl.num_programs(2) - 1
    # Spread the weight-KL work across batch tiles so megacore sharding of the
    # M axis does not pile all EUP/XLU work onto one TensorCore.
    kl_owner = j % pl.num_programs(0)

    @pl.when(k == 0)
    def _init():
        acc_ref[...] = jnp.zeros_like(acc_ref)
        kl_sc[...] = jnp.zeros_like(kl_sc)

    # Reparameterized weight sample: f32 for the KL math, matmul_dtype (bf16
    # by default) for the MXU.  (tk, tn) tile, K-major, lane-dense N.
    eps_w = epsw_ref[...].astype(f32)
    w_sig = wms_ref[1].astype(f32)
    w = wms_ref[0].astype(f32) + w_sig * eps_w

    x_mm = x_ref[...]
    w_mm = w if matmul_dtype is None else w.astype(matmul_dtype)
    acc_ref[...] += jnp.dot(x_mm, w_mm, preferred_element_type=f32)

    # Weight KL: computed once per weight tile (by this tile's owner i).
    @pl.when(i == kl_owner)
    def _weight_kl():
        terms = _kl_terms(w, eps_w, w_sig)
        if mask_kl:
            tk_, tn_ = terms.shape
            rows = jax.lax.broadcasted_iota(jnp.int32, (tk_, tn_), 0) + k * tk_
            cols = jax.lax.broadcasted_iota(jnp.int32, (tk_, tn_), 1) + j * tn_
            terms = jnp.where((rows < in_features) & (cols < out_features),
                              terms, 0.0)
        # Sublane reduce only; the single cross-lane reduce is in finalize.
        kl_sc[...] += jnp.sum(terms, axis=0, keepdims=True)

    # Finalize: sample bias once, add it, emit y tile and the KL partial.
    @pl.when(k == k_last)
    def _finalize():
        eps_b = epsb_ref[...].astype(f32)              # (1, tn)
        b_sig = bms_ref[1].astype(f32)
        b = bms_ref[0].astype(f32) + b_sig * eps_b
        y_ref[...] = (acc_ref[...] + b).astype(y_ref.dtype)

        @pl.when(i == kl_owner)
        def _bias_kl():
            terms = _kl_terms(b, eps_b, b_sig)
            if mask_kl:
                tn_ = terms.shape[-1]
                cols = jax.lax.broadcasted_iota(jnp.int32, (1, tn_), 1) + j * tn_
                terms = jnp.where(cols < out_features, terms, 0.0)
            kl_sc[...] += terms

        kl_ref[0, 0] = jnp.sum(kl_sc[...])


def prepare_bayesian_linear_params(w_mu, w_sigma, b_mu, b_sigma,
                                   *, tk=512, tn=512,
                                   param_dtype=jnp.bfloat16):
    """One-time (init-time) conversion of persistent parameters to the kernel
    layout: (K, N) = (in, out) orientation, padded to the tile grid, cast to
    param_dtype, mu/sigma stacked so each grid step issues one weight DMA."""
    out_features, in_features = w_mu.shape

    tk = max(128, min((tk // 128) * 128, _round_up(in_features, 128)))
    tn = max(128, min((tn // 128) * 128, _round_up(out_features, 128)))
    Kp = _round_up(in_features, tk)
    Np = _round_up(out_features, tn)

    wmu = _pad2(w_mu.T.astype(param_dtype), Kp, Np)
    wsig = _pad2(w_sigma.T.astype(param_dtype), Kp, Np, val=_PRIOR_SIGMA)
    bmu = _pad2(b_mu.reshape(1, -1).astype(param_dtype), 1, Np)
    bsig = _pad2(b_sigma.reshape(1, -1).astype(param_dtype), 1, Np,
                 val=_PRIOR_SIGMA)

    return dict(
        w=jnp.stack([wmu, wsig]),              # (2, Kp, Np)
        b=jnp.stack([bmu, bsig]),              # (2, 1, Np)
        in_features=in_features, out_features=out_features,
        tk=tk, tn=tn, param_dtype=param_dtype,
    )


def bayesian_linear_forward(params, x, eps_w, eps_b, *, tm=None,
                            matmul_dtype=jnp.bfloat16):
    """Returns (y, kl) like BayesianLinear.forward(x, kl=True, frozen=False).

    `params` comes from prepare_bayesian_linear_params (layout prep hoisted to
    init).  `eps_w` is the reparameterization noise, already in
    (in_features, out_features) orientation (iid N(0,1), i.e. the same
    distribution as torch's (out, in)-shaped rsample noise)."""
    in_features = params['in_features']
    out_features = params['out_features']
    tk, tn = params['tk'], params['tn']
    pd = params['param_dtype']
    _, Kp, Np = params['w'].shape

    batch = x.shape[0]
    assert x.shape[1] == in_features

    if tm is None:
        tm = min(512, _round_up(batch, 8))
    tm = max(8, (tm // 8) * 8)
    Mp = _round_up(batch, tm)

    # v7x megacore: if there would be a single (i, j) tile but N can still be
    # split on 128 lanes, halve tn so both TensorCores get work.
    if Mp // tm == 1 and Np // tn == 1 and tn % 256 == 0:
        tn = tn // 2

    grid = (Mp // tm, Np // tn, Kp // tk)
    f32 = jnp.float32
    x_dtype = f32 if matmul_dtype is None else matmul_dtype

    x_p = _pad2(x.astype(x_dtype), Mp, Kp)
    epsw_p = _pad2(eps_w.astype(pd), Kp, Np)
    epsb_p = _pad2(eps_b.reshape(1, -1).astype(pd), 1, Np)

    # Only mask padded KL terms when padding actually exists (trace-time).
    mask_kl = (Kp != in_features) or (Np != out_features)

    x_spec = pl.BlockSpec((tm, tk), lambda i, j, k: (i, k))
    w_spec = pl.BlockSpec((2, tk, tn), lambda i, j, k: (0, k, j))
    epsw_spec = pl.BlockSpec((tk, tn), lambda i, j, k: (k, j))
    b_spec = pl.BlockSpec((2, 1, tn), lambda i, j, k: (0, 0, j))
    epsb_spec = pl.BlockSpec((1, tn), lambda i, j, k: (0, j))

    p_bytes = jnp.dtype(pd).itemsize
    cost = pl.CostEstimate(
        flops=2 * Mp * Np * Kp,
        transcendentals=Kp * Np + Np,                     # jnp.log per element
        bytes_accessed=(Mp * Kp * jnp.dtype(x_dtype).itemsize   # x
                        + 3 * Kp * Np * p_bytes                 # mu, sigma, eps
                        + 3 * Np * p_bytes                      # bias params
                        + Mp * Np * 4                           # y
                        + grid[0] * grid[1] * 4),               # kl partials
    )

    y_pad, kl_parts = pl.pallas_call(
        functools.partial(bayesian_linear_kernel,
                          in_features=in_features,
                          out_features=out_features,
                          mask_kl=mask_kl,
                          matmul_dtype=matmul_dtype),
        out_shape=(
            jax.ShapeDtypeStruct((Mp, Np), f32),
            jax.ShapeDtypeStruct((grid[0], grid[1]), f32),
        ),
        grid_spec=pltpu.PrefetchScalarGridSpec(
            num_scalar_prefetch=0,
            grid=grid,
            in_specs=[x_spec, w_spec, epsw_spec, b_spec, epsb_spec],
            out_specs=(
                pl.BlockSpec((tm, tn), lambda i, j, k: (i, j)),    # y (lane-dense N)
                pl.BlockSpec((1, 1), lambda i, j, k: (i, j),
                             memory_space=pltpu.MemorySpace.SMEM), # KL partials
            ),
            scratch_shapes=[
                pltpu.VMEM((tm, tn), jnp.float32),   # f32 matmul accumulator
                pltpu.VMEM((1, tn), jnp.float32),    # lane-shaped KL accumulator
            ],
        ),
        compiler_params=pltpu.CompilerParams(
            dimension_semantics=("parallel", "parallel", "arbitrary")),
        cost_estimate=cost,
    )(x_p, params['w'], epsw_p, params['b'], epsb_p)

    y = y_pad[:batch, :out_features]
    kl = jnp.sum(kl_parts)     # exactly one i row per j column is non-zero
    return y, kl


if __name__ == "__main__":
    key = jax.random.PRNGKey(0)
    k_x, k_wmu, k_wsig, k_bmu, k_bsig, k_ew, k_eb = jax.random.split(key, 7)

    batch, in_features, out_features = 8, 32, 32

    x = jax.random.normal(k_x, (batch, in_features), dtype=jnp.float32)

    # Deterministic parameter init mirroring reset_parameters(): normal(0, 0.1).
    # Sigmas are |N(0, 0.1)| + eps so the Normal distributions are valid.
    w_mu = 0.1 * jax.random.normal(k_wmu, (out_features, in_features), dtype=jnp.float32)
    w_sigma = jnp.abs(0.1 * jax.random.normal(k_wsig, (out_features, in_features),
                                              dtype=jnp.float32)) + 1e-3
    b_mu = 0.1 * jax.random.normal(k_bmu, (out_features,), dtype=jnp.float32)
    b_sigma = jnp.abs(0.1 * jax.random.normal(k_bsig, (out_features,),
                                              dtype=jnp.float32)) + 1e-3

    # Reparameterization noise (rsample's eps), sampled directly in the
    # kernel's (in, out) layout — iid N(0,1), same distribution as torch's
    # (out, in)-shaped noise.
    eps_w = jax.random.normal(k_ew, (in_features, out_features), dtype=jnp.float32)
    eps_b = jax.random.normal(k_eb, (out_features,), dtype=jnp.float32)

    # One-time layout/dtype prep (init-time), then the forward pass.
    params = prepare_bayesian_linear_params(w_mu, w_sigma, b_mu, b_sigma)
    y, kl = bayesian_linear_forward(params, x, eps_w, eps_b)
    jax.block_until_ready((y, kl))

    # Pure-JAX reference computed on the same bf16-stored values the kernel
    # sees (so the check tests kernel correctness, not quantization error).
    bf, f32 = jnp.bfloat16, jnp.float32
    wmu_r = w_mu.T.astype(bf).astype(f32)
    wsig_r = w_sigma.T.astype(bf).astype(f32)
    epsw_r = eps_w.astype(bf).astype(f32)
    bmu_r = b_mu.astype(bf).astype(f32)
    bsig_r = b_sigma.astype(bf).astype(f32)
    epsb_r = eps_b.astype(bf).astype(f32)
    x_r = x.astype(bf).astype(f32)

    w_ref = wmu_r + wsig_r * epsw_r                    # (in, out), f32 sample
    b_ref = bmu_r + bsig_r * epsb_r
    y_ref = x_r @ w_ref.astype(bf).astype(f32) + b_ref  # bf16 MXU inputs, f32 acc

    def logp(v, mu, s):
        return -0.5 * ((v - mu) / s) ** 2 - jnp.log(s) - 0.5 * math.log(2 * math.pi)

    kl_ref = (jnp.sum(logp(w_ref, wmu_r, wsig_r) - logp(w_ref, 0.0, 0.1))
              + jnp.sum(logp(b_ref, bmu_r, bsig_r) - logp(b_ref, 0.0, 0.1)))

    assert y.shape == (batch, out_features)
    assert jnp.allclose(y, y_ref, atol=5e-3, rtol=5e-3), "linear output mismatch"
    assert jnp.allclose(kl, kl_ref, atol=2e-1, rtol=2e-3), "KL mismatch"

    print("KERNEL_OK")
</pallas_src>

<mosaic_0001>
module attributes {stable_mosaic.version = 11 : i64} {
  func.func @bayesian_linear_kernel(%arg0: i32, %arg1: i32, %arg2: i32, %arg3: memref<8x128xbf16, #tpu.memory_space<vmem>>, %arg4: memref<2x128x128xbf16, #tpu.memory_space<vmem>>, %arg5: memref<128x128xbf16, #tpu.memory_space<vmem>>, %arg6: memref<2x1x128xbf16, #tpu.memory_space<vmem>>, %arg7: memref<1x128xbf16, #tpu.memory_space<vmem>>, %arg8: memref<8x128xf32, #tpu.memory_space<vmem>>, %arg9: memref<1x1xf32, #tpu.memory_space<smem>>, %arg10: memref<8x128xf32, #tpu.memory_space<vmem>>, %arg11: memref<1x128xf32, #tpu.memory_space<vmem>>) attributes {dimension_semantics = [#tpu.dimension_semantics<parallel>, #tpu.dimension_semantics<parallel>, #tpu.dimension_semantics<arbitrary>], iteration_bounds = array<i64: 1, 1, 1>, scalar_prefetch = 0 : i64, scratch_operands = 2 : i64, tpu.core_type = #tpu.core_type<tc>, window_params = [{transform_indices = @transform_0, window_bounds = array<i64: 8, 128>}, {transform_indices = @transform_1, window_bounds = array<i64: 2, 128, 128>}, {transform_indices = @transform_2, window_bounds = array<i64: 128, 128>}, {transform_indices = @transform_3, window_bounds = array<i64: 2, 1, 128>}, {transform_indices = @transform_4, window_bounds = array<i64: 1, 128>}, {transform_indices = @transform_5, window_bounds = array<i64: 8, 128>}, {transform_indices = @transform_6, window_bounds = array<i64: 1, 1>}]} {
    %c1_i32 = arith.constant 1 : i32
    %c0_i32 = arith.constant 0 : i32
    %0 = arith.cmpi eq, %c1_i32, %c0_i32 : i32
    %c1_i32_0 = arith.constant 1 : i32
    %1 = arith.select %0, %c1_i32_0, %c1_i32 : i32
    %2 = arith.remsi %arg1, %1 : i32
    %c0_i32_1 = arith.constant 0 : i32
    %3 = arith.cmpi ne, %2, %c0_i32_1 : i32
    %c0_i32_2 = arith.constant 0 : i32
    %4 = arith.cmpi slt, %2, %c0_i32_2 : i32
    %c0_i32_3 = arith.constant 0 : i32
    %5 = arith.cmpi slt, %1, %c0_i32_3 : i32
    %6 = arith.xori %4, %5 : i1
    %7 = arith.andi %6, %3 : i1
    %8 = arith.addi %2, %1 : i32
    %9 = arith.select %7, %8, %2 : i32
    %c0_i32_4 = arith.constant 0 : i32
    %10 = arith.cmpi eq, %arg2, %c0_i32_4 : i32
    %11 = arith.extui %10 : i1 to i32
    %c0_i32_5 = arith.constant 0 : i32
    %12 = arith.cmpi ne, %11, %c0_i32_5 : i32
    scf.if %12 {
      %cst_21 = arith.constant 0.000000e+00 : f32
      %35 = vector.broadcast %cst_21 : f32 to vector<8x128xf32>
      %c0_22 = arith.constant 0 : index
      %c0_23 = arith.constant 0 : index
      %36 = vector.load %arg10[%c0_22, %c0_23] : memref<8x128xf32, #tpu.memory_space<vmem>>, vector<8x128xf32>
      tpu.vector_store %arg10[%c0_22, %c0_23], %35 {strides = array<i32>} : memref<8x128xf32, #tpu.memory_space<vmem>>, vector<8x128xf32>,
      %cst_24 = arith.constant 0.000000e+00 : f32
      %37 = vector.broadcast %cst_24 : f32 to vector<1x128xf32>
      %c0_25 = arith.constant 0 : index
      %c0_26 = arith.constant 0 : index
      %38 = vector.load %arg11[%c0_25, %c0_26] : memref<1x128xf32, #tpu.memory_space<vmem>>, vector<1x128xf32>
      tpu.vector_store %arg11[%c0_25, %c0_26], %37 {strides = array<i32>} : memref<1x128xf32, #tpu.memory_space<vmem>>, vector<1x128xf32>,
    } else {
    }
    %c0 = arith.constant 0 : index
    %c0_6 = arith.constant 0 : index
    %13 = vector.load %arg5[%c0, %c0_6] : memref<128x128xbf16, #tpu.memory_space<vmem>>, vector<128x128xbf16>
    %14 = arith.extf %13 : vector<128x128xbf16> to vector<128x128xf32>
    %c1 = arith.constant 1 : index
    %c0_7 = arith.constant 0 : index
    %c0_8 = arith.constant 0 : index
    %15 = vector.load %arg4[%c1, %c0_7, %c0_8] : memref<2x128x128xbf16, #tpu.memory_space<vmem>>, vector<1x128x128xbf16>
    %16 = vector.shape_cast %15 : vector<1x128x128xbf16> to vector<128x128xbf16>
    %17 = arith.extf %16 : vector<128x128xbf16> to vector<128x128xf32>
    %c0_9 = arith.constant 0 : index
    %c0_10 = arith.constant 0 : index
    %c0_11 = arith.constant 0 : index
    %18 = vector.load %arg4[%c0_9, %c0_10, %c0_11] : memref<2x128x128xbf16, #tpu.memory_space<vmem>>, vector<1x128x128xbf16>
    %19 = vector.shape_cast %18 : vector<1x128x128xbf16> to vector<128x128xbf16>
    %20 = arith.extf %19 : vector<128x128xbf16> to vector<128x128xf32>
    %21 = arith.mulf %17, %14 : vector<128x128xf32>
    %22 = arith.addf %20, %21 : vector<128x128xf32>
    %c0_12 = arith.constant 0 : index
    %c0_13 = arith.constant 0 : index
    %23 = vector.load %arg3[%c0_12, %c0_13] : memref<8x128xbf16, #tpu.memory_space<vmem>>, vector<8x128xbf16>
    %24 = arith.truncf %22 : vector<128x128xf32> to vector<128x128xbf16>
    %c0_14 = arith.constant 0 : index
    %c0_15 = arith.constant 0 : index
    %25 = vector.load %arg10[%c0_14, %c0_15] : memref<8x128xf32, #tpu.memory_space<vmem>>, vector<8x128xf32>
    %cst = arith.constant dense<0.000000e+00> : vector<8x128xf32>
    %26 = tpu.matmul %23, %24, %cst {dimension_numbers = #tpu.dot_dimension_numbers<[1], [0], [0], [1], [0, 0, 1, 1], [], []>} : vector<8x128xbf16>, vector<128x128xbf16>, vector<8x128xf32> -> vector<8x128xf32>
    %27 = arith.addf %25, %26 : vector<8x128xf32>
    %c0_16 = arith.constant 0 : index
    %c0_17 = arith.constant 0 : index
    %28 = vector.load %arg10[%c0_16, %c0_17] : memref<8x128xf32, #tpu.memory_space<vmem>>, vector<8x128xf32>
    tpu.vector_store %arg10[%c0_16, %c0_17], %27 {strides = array<i32>} : memref<8x128xf32, #tpu.memory_space<vmem>>, vector<8x128xf32>,
    %29 = arith.cmpi eq, %arg0, %9 : i32
    %30 = arith.extui %29 : i1 to i32
    %c0_i32_18 = arith.constant 0 : i32
    %31 = arith.cmpi ne, %30, %c0_i32_18 : i32
    scf.if %31 {
      %cst_21 = arith.constant 5.000000e+01 : f32
      %35 = vector.broadcast %cst_21 : f32 to vector<128x128xf32>
      %36 = arith.mulf %35, %22 : vector<128x128xf32>
      %37 = arith.mulf %36, %22 : vector<128x128xf32>
      %cst_22 = arith.constant 5.000000e-01 : f32
      %38 = vector.broadcast %cst_22 : f32 to vector<128x128xf32>
      %39 = arith.mulf %38, %14 : vector<128x128xf32>
      %40 = arith.mulf %39, %14 : vector<128x128xf32>
      %41 = arith.subf %37, %40 : vector<128x128xf32>
      %42 = math.log %17 : vector<128x128xf32>
      %43 = arith.subf %41, %42 : vector<128x128xf32>
      %cst_23 = arith.constant -2.30258512 : f32
      %44 = vector.broadcast %cst_23 : f32 to vector<128x128xf32>
      %45 = arith.addf %43, %44 : vector<128x128xf32>
      %46 = tpu.iota {dimensions = array<i32: 0>} : vector<128x128xi32>
      %c128_i32 = arith.constant 128 : i32
      %47 = arith.muli %arg2, %c128_i32 : i32
      %48 = vector.broadcast %47 : i32 to vector<128x128xi32>
      %49 = arith.addi %46, %48 : vector<128x128xi32>
      %50 = tpu.iota {dimensions = array<i32: 1>} : vector<128x128xi32>
      %c128_i32_24 = arith.constant 128 : i32
      %51 = arith.muli %arg1, %c128_i32_24 : i32
      %52 = vector.broadcast %51 : i32 to vector<128x128xi32>
      %53 = arith.addi %50, %52 : vector<128x128xi32>
      %c32_i32 = arith.constant 32 : i32
      %54 = vector.broadcast %c32_i32 : i32 to vector<128x128xi32>
      %55 = arith.cmpi slt, %49, %54 : vector<128x128xi32>
      %c32_i32_25 = arith.constant 32 : i32
      %56 = vector.broadcast %c32_i32_25 : i32 to vector<128x128xi32>
      %57 = arith.cmpi slt, %53, %56 : vector<128x128xi32>
      %58 = arith.andi %55, %57 : vector<128x128xi1>
      %cst_26 = arith.constant 0.000000e+00 : f32
      %59 = vector.broadcast %cst_26 : f32 to vector<128x128xf32>
      %60 = arith.select %58, %45, %59 : vector<128x128xi1>, vector<128x128xf32>
      %c0_27 = arith.constant 0 : index
      %c0_28 = arith.constant 0 : index
      %61 = vector.load %arg11[%c0_27, %c0_28] : memref<1x128xf32, #tpu.memory_space<vmem>>, vector<1x128xf32>
      %cst_29 = arith.constant dense<0.000000e+00> : vector<128xf32>
      %62 = vector.multi_reduction <add>, %60, %cst_29 [0] : vector<128x128xf32> to vector<128xf32>
      %63 = vector.shape_cast %62 : vector<128xf32> to vector<1x128xf32>
      %64 = arith.addf %61, %63 : vector<1x128xf32>
      %c0_30 = arith.constant 0 : index
      %c0_31 = arith.constant 0 : index
      %65 = vector.load %arg11[%c0_30, %c0_31] : memref<1x128xf32, #tpu.memory_space<vmem>>, vector<1x128xf32>
      tpu.vector_store %arg11[%c0_30, %c0_31], %64 {strides = array<i32>} : memref<1x128xf32, #tpu.memory_space<vmem>>, vector<1x128xf32>,
    } else {
    }
    %c0_i32_19 = arith.constant 0 : i32
    %32 = arith.cmpi eq, %arg2, %c0_i32_19 : i32
    %33 = arith.extui %32 : i1 to i32
    %c0_i32_20 = arith.constant 0 : i32
    %34 = arith.cmpi ne, %33, %c0_i32_20 : i32
    scf.if %34 {
      %c0_21 = arith.constant 0 : index
      %c0_22 = arith.constant 0 : index
      %35 = vector.load %arg7[%c0_21, %c0_22] : memref<1x128xbf16, #tpu.memory_space<vmem>>, vector<1x128xbf16>
      %36 = arith.extf %35 : vector<1x128xbf16> to vector<1x128xf32>
      %c1_23 = arith.constant 1 : index
      %c0_24 = arith.constant 0 : index
      %c0_25 = arith.constant 0 : index
      %37 = vector.load %arg6[%c1_23, %c0_24, %c0_25] : memref<2x1x128xbf16, #tpu.memory_space<vmem>>, vector<1x1x128xbf16>
      %38 = vector.shape_cast %37 : vector<1x1x128xbf16> to vector<1x128xbf16>
      %39 = arith.extf %38 : vector<1x128xbf16> to vector<1x128xf32>
      %c0_26 = arith.constant 0 : index
      %c0_27 = arith.constant 0 : index
      %c0_28 = arith.constant 0 : index
      %40 = vector.load %arg6[%c0_26, %c0_27, %c0_28] : memref<2x1x128xbf16, #tpu.memory_space<vmem>>, vector<1x1x128xbf16>
      %41 = vector.shape_cast %40 : vector<1x1x128xbf16> to vector<1x128xbf16>
      %42 = arith.extf %41 : vector<1x128xbf16> to vector<1x128xf32>
      %43 = arith.mulf %39, %36 : vector<1x128xf32>
      %44 = arith.addf %42, %43 : vector<1x128xf32>
      %c0_29 = arith.constant 0 : index
      %c0_30 = arith.constant 0 : index
      %45 = vector.load %arg10[%c0_29, %c0_30] : memref<8x128xf32, #tpu.memory_space<vmem>>, vector<8x128xf32>
      %46 = vector.broadcast %44 : vector<1x128xf32> to vector<8x128xf32>
      %47 = arith.addf %45, %46 : vector<8x128xf32>
      %c0_31 = arith.constant 0 : index
      %c0_32 = arith.constant 0 : index
      %48 = vector.load %arg8[%c0_31, %c0_32] : memref<8x128xf32, #tpu.memory_space<vmem>>, vector<8x128xf32>
      tpu.vector_store %arg8[%c0_31, %c0_32], %47 {strides = array<i32>} : memref<8x128xf32, #tpu.memory_space<vmem>>, vector<8x128xf32>,
      %49 = arith.cmpi eq, %arg0, %9 : i32
      %50 = arith.extui %49 : i1 to i32
      %c0_i32_33 = arith.constant 0 : i32
      %51 = arith.cmpi ne, %50, %c0_i32_33 : i32
      scf.if %51 {
        %cst_39 = arith.constant 5.000000e+01 : f32
        %58 = vector.broadcast %cst_39 : f32 to vector<1x128xf32>
        %59 = arith.mulf %58, %44 : vector<1x128xf32>
        %60 = arith.mulf %59, %44 : vector<1x128xf32>
        %cst_40 = arith.constant 5.000000e-01 : f32
        %61 = vector.broadcast %cst_40 : f32 to vector<1x128xf32>
        %62 = arith.mulf %61, %36 : vector<1x128xf32>
        %63 = arith.mulf %62, %36 : vector<1x128xf32>
        %64 = arith.subf %60, %63 : vector<1x128xf32>
        %65 = math.log %39 : vector<1x128xf32>
        %66 = arith.subf %64, %65 : vector<1x128xf32>
        %cst_41 = arith.constant -2.30258512 : f32
        %67 = vector.broadcast %cst_41 : f32 to vector<1x128xf32>
        %68 = arith.addf %66, %67 : vector<1x128xf32>
        %69 = tpu.iota {dimensions = array<i32: 1>} : vector<1x128xi32>
        %c128_i32 = arith.constant 128 : i32
        %70 = arith.muli %arg1, %c128_i32 : i32
        %71 = vector.broadcast %70 : i32 to vector<1x128xi32>
        %72 = arith.addi %69, %71 : vector<1x128xi32>
        %c32_i32 = arith.constant 32 : i32
        %73 = vector.broadcast %c32_i32 : i32 to vector<1x128xi32>
        %74 = arith.cmpi slt, %72, %73 : vector<1x128xi32>
        %cst_42 = arith.constant 0.000000e+00 : f32
        %75 = vector.broadcast %cst_42 : f32 to vector<1x128xf32>
        %76 = arith.select %74, %68, %75 : vector<1x128xi1>, vector<1x128xf32>
        %c0_43 = arith.constant 0 : index
        %c0_44 = arith.constant 0 : index
        %77 = vector.load %arg11[%c0_43, %c0_44] : memref<1x128xf32, #tpu.memory_space<vmem>>, vector<1x128xf32>
        %78 = arith.addf %77, %76 : vector<1x128xf32>
        %c0_45 = arith.constant 0 : index
        %c0_46 = arith.constant 0 : index
        %79 = vector.load %arg11[%c0_45, %c0_46] : memref<1x128xf32, #tpu.memory_space<vmem>>, vector<1x128xf32>
        tpu.vector_store %arg11[%c0_45, %c0_46], %78 {strides = array<i32>} : memref<1x128xf32, #tpu.memory_space<vmem>>, vector<1x128xf32>,
      } else {
      }
      %c0_34 = arith.constant 0 : index
      %c0_35 = arith.constant 0 : index
      %52 = vector.load %arg11[%c0_34, %c0_35] : memref<1x128xf32, #tpu.memory_space<vmem>>, vector<1x128xf32>
      %53 = vector.shape_cast %52 : vector<1x128xf32> to vector<1x1x128xf32>
      %cst_36 = arith.constant dense<0.000000e+00> : vector<1xf32>
      %54 = vector.multi_reduction <add>, %53, %cst_36 [1, 2] : vector<1x1x128xf32> to vector<1xf32>
      %55 = vector.shape_cast %54 : vector<1xf32> to vector<1x1x1xf32>
      %56 = vector.extract %55[0, 0, 0] : f32 from vector<1x1x1xf32>
      %c0_37 = arith.constant 0 : index
      %c0_38 = arith.constant 0 : index
      %57 = memref.load %arg9[%c0_37, %c0_38] : memref<1x1xf32, #tpu.memory_space<smem>>
      memref.store %56, %arg9[%c0_37, %c0_38] : memref<1x1xf32, #tpu.memory_space<smem>>
    } else {
    }
    return
  }
  func.func @transform_0(%arg0: i32, %arg1: i32, %arg2: i32) -> (i32, i32) {
    %c0_i32 = arith.constant 0 : i32
    return %arg0, %arg2 : i32, i32
  }
  func.func @transform_1(%arg0: i32, %arg1: i32, %arg2: i32) -> (i32, i32, i32) {
    %c0_i32 = arith.constant 0 : i32
    %c0_i32_0 = arith.constant 0 : i32
    return %c0_i32, %arg2, %arg1 : i32, i32, i32
  }
  func.func @transform_2(%arg0: i32, %arg1: i32, %arg2: i32) -> (i32, i32) {
    %c0_i32 = arith.constant 0 : i32
    return %arg2, %arg1 : i32, i32
  }
  func.func @transform_3(%arg0: i32, %arg1: i32, %arg2: i32) -> (i32, i32, i32) {
    %c0_i32 = arith.constant 0 : i32
    %c0_i32_0 = arith.constant 0 : i32
    %c0_i32_1 = arith.constant 0 : i32
    return %c0_i32, %c0_i32_0, %arg1 : i32, i32, i32
  }
  func.func @transform_4(%arg0: i32, %arg1: i32, %arg2: i32) -> (i32, i32) {
    %c0_i32 = arith.constant 0 : i32
    %c0_i32_0 = arith.constant 0 : i32
    return %c0_i32, %arg1 : i32, i32
  }
  func.func @transform_5(%arg0: i32, %arg1: i32, %arg2: i32) -> (i32, i32) {
    %c0_i32 = arith.constant 0 : i32
    return %arg0, %arg1 : i32, i32
  }
  func.func @transform_6(%arg0: i32, %arg1: i32, %arg2: i32) -> (i32, i32) {
    %c0_i32 = arith.constant 0 : i32
    return %arg0, %arg1 : i32, i32
  }
}

</mosaic_0001>

<bundles_post_ra>
// kernel: tpu_custom_call.1
= control target key start
LH: loop header
LB: loop body
LE: loop exit
PB: predicated region body
PF: predicated region fallthrough
CT: control target
= control target key end

     0   :  { %12 = vsyncpa [#allocation5], 0  ;;  %s1028_s0 = inlined_call_operand.hbm [shape: bf16[8,128], index: 0, kind: input, shape index: {}]   ;;  %s1029_s1 = inlined_call_operand.hbm [shape: bf16[2,128,128], index: 1, kind: input, shape index: {}]   ;;  %s1030_s2 = inlined_call_operand.hbm [shape: bf16[128,128], index: 2, kind: input, shape index: {}]   ;;  %s1031_s3 = inlined_call_operand.vmem [shape: bf16[2,1,128], index: 3, kind: input, shape index: {}]   ;;  %s1032_s4 = inlined_call_operand.vmem [shape: bf16[1,128], index: 4, kind: input, shape index: {}]   ;;  %s1033_s5 = inlined_call_operand.hbm [shape: f32[8,128], index: 5, kind: output, shape index: {0}]   ;;  %s1034_s6 = inlined_call_operand.hbm [shape: f32[1,1], index: 6, kind: output, shape index: {1}]  }
   0x1   :  { %13 = vsyncpa [#allocation9], 0 }
   0x2   :  { %14 = vsyncpa [#allocation6], 0 }
   0x3   :  { %15 = vsyncpa [#allocation7], 0  ;;  %s870_s21 = smov [#allocation8]   ;;  %s764_s25 = scalar_lea.hbm %s1029_s1, 2048 }
   0x4   :  { %s31_s22 = sshll.u32 %s870_s21, 4  ;;  %p765_p0 = scmp.ne.s32.totalorder %s1029_s1, %s764_s25  ;;  %s32_s22 = int_to_ptr.vmem [resolvable:$true] %s31_s22 }
   0x5   :  { %p768_p1 = scmp.lt.u32.totalorder %s764_s25, %s1029_s1 }
   0x7   :  { %p770_p2 = pnand %p768_p1, %p765_p0 }
   0x9   :  { %773 = shalt.err (!%p770_p2)
}
   0xa   :  { %s774_s30 = scalar_lea.vmem %s32_s22, 2048  ;;  %p779_p4 = scmp.lt.s32.totalorder %s32_s22, %s32_s22 }
   0xb   :  { %p775_p3 = scmp.ne.s32.totalorder %s32_s22, %s774_s30  ;;  %p780_p5 = scmp.lt.s32.totalorder %s774_s30, %s774_s30 }
   0xd   :  { %p781_p6 = por %p780_p5, %p779_p4 }
   0xf   :  { %p782_p7 = pnand %p781_p6, %p775_p3 }
  0x11   :  { %785 = shalt.err (!%p782_p7)
}
  0x12   :  { %s871_s7 = smov 64   ;;  %s872_s8 = smov 4  }
  0x13   :  { %37 = dma.hbm_to_vmem [thread:$0]  %s1029_s1, 2048, %s32_s22, [#allocation9], %s871_s7, %s871_s7, %s872_s8  }
  0x14   :  { %s873_s11 = smov [#allocation4]   ;;  %s874_s13 = smov [#allocation10]  }
  0x15   :  { %s22_s12 = sshll.u32 %s873_s11, 4  ;;  %s43_s14 = sshll.u32 %s874_s13, 4  ;;  %s23_s12 = int_to_ptr.vmem [resolvable:$true] %s22_s12  ;;  %s44_s14 = int_to_ptr.vmem [resolvable:$true] %s43_s14 }
  0x16   :  { %s786_s17 = scalar_lea.hbm %s1028_s0, 64 }
  0x17   :  { %p787_p8 = scmp.ne.s32.totalorder %s1028_s0, %s786_s17  ;;  %p790_p9 = scmp.lt.u32.totalorder %s786_s17, %s1028_s0 }
  0x19   :  { %p792_p10 = pnand %p790_p9, %p787_p8 }
  0x1b   :  { %795 = shalt.err (!%p792_p10)
}
  0x1c   :  { %s796_s1 = scalar_lea.vmem %s23_s12, 64  ;;  %p801_p12 = scmp.lt.s32.totalorder %s23_s12, %s23_s12 }
  0x1d   :  { %p797_p11 = scmp.ne.s32.totalorder %s23_s12, %s796_s1  ;;  %p802_p13 = scmp.lt.s32.totalorder %s796_s1, %s796_s1 }
  0x1f   :  { %p803_p0 = por %p802_p13, %p801_p12 }
  0x21   :  { %p804_p1 = pnand %p803_p0, %p797_p11 }
  0x23   :  { %807 = shalt.err (!%p804_p1)
}
  0x24   :  { %25 = dma.hbm_to_vmem [thread:$0]  %s1028_s0, 64, %s23_s12, [#allocation5]  }
  0x25   :  { %s808_s26 = scalar_lea.hbm %s1030_s2, 1024 }
  0x26   :  { %p809_p2 = scmp.ne.s32.totalorder %s1030_s2, %s808_s26  ;;  %p812_p3 = scmp.lt.u32.totalorder %s808_s26, %s1030_s2 }
  0x28   :  { %p814_p4 = pnand %p812_p3, %p809_p2 }
  0x2a   :  { %817 = shalt.err (!%p814_p4)
}
  0x2b   :  { %s818_s9 = scalar_lea.vmem %s44_s14, 1024  ;;  %p823_p6 = scmp.lt.s32.totalorder %s44_s14, %s44_s14 }
  0x2c   :  { %p819_p5 = scmp.ne.s32.totalorder %s44_s14, %s818_s9  ;;  %p824_p7 = scmp.lt.s32.totalorder %s818_s9, %s818_s9 }
  0x2e   :  { %p825_p8 = por %p824_p7, %p823_p6 }
  0x30   :  { %p826_p9 = pnand %p825_p8, %p819_p5 }
  0x32   :  { %829 = shalt.err (!%p826_p9)
}
  0x33   :  { %49 = dma.hbm_to_vmem [thread:$0]  %s1030_s2, 1024, %s44_s14, [#allocation9], %s871_s7, %s871_s7, %s872_s8  }
  0x34   :  { %862 = dma.done.wait [#allocation5], 64  }
  0x35   :  { %863 = vsyncadd [#allocation5], 4294967232 }
  0x36   :  { %864 = dma.done.wait [#allocation9], 3072  }
  0x37   :  { %865 = vsyncadd [#allocation9], 4294964224  ;;  %v875_v0 = vmov 0.0   ;;  %vm876_vm0 = vmmov 0   ;;  %v598_v1 = vld [vmem:[#allocation10] sm:$0xff]   ;;  %v434_v4 = vlaneseq  ;;  %v693_v18 = vld [vmem:[#allocation10 + $0x8] sm:$0xff]  }
  0x38   :  { %723 = vmatprep.subr.bf16.mxu0 %v875_v0  ;;  %69 = vst [vmem:[#allocation3] sm:$0x1] %v875_v0  ;;  %739 = vmatprep.mubr.msk.bf16.mxu0 %vm876_vm0, %v875_v0  ;;  %v630_v2 = vld [vmem:[#allocation8 + $0x40] sm:$0xff]   ;;  %v599_v5 = vunpack.c.l.bf16 %v598_v1  ;;  %v600_v6 = vunpack.c.h.bf16 %v598_v1  ;;  %v515_v9 = vld [vmem:[%s1032_s4] sm:$0x1]  ;;  %v700_v25 = vld [vmem:[#allocation8 + $0x48] sm:$0xff]   ;;  %v603_v28 = vunpack.c.l.bf16 %v693_v18  ;;  %v604_v35 = vunpack.c.h.bf16 %v693_v18 }
  0x39   :  { %v662_v3 = vld [vmem:[#allocation8] sm:$0xff]   ;;  %v631_v7 = vunpack.c.l.bf16 %v630_v2  ;;  %v632_v8 = vunpack.c.h.bf16 %v630_v2  ;;  %v965_v10 = vld [vmem:[%s1031_s3 + $0x1] sm:$0x1]  ;;  %v516_v13 = vunpack.c.l.bf16 %v515_v9  ;;  %v520_v14 = vld [vmem:[%s1031_s3] sm:$0x1]  ;;  %v972_v23 = vand.u32 127, %v434_v4 }
  0x3a   :  { %v663_v11 = vunpack.c.l.bf16 %v662_v3  ;;  %v664_v12 = vunpack.c.h.bf16 %v662_v3  ;;  %v287_v17 = vmul.f32 0.5, %v599_v5  ;;  %v288_v19 = vmul.f32 0.5, %v600_v6  ;;  %v707_v29 = vld [vmem:[#allocation8 + $0x8] sm:$0xff]   ;;  %v694_v44 = vld [vmem:[#allocation10 + $0x10] sm:$0xff]   ;;  %v695_v62 = vld [vmem:[#allocation10 + $0x18] sm:$0xff]   ;;  %s877_s3 = smov [#allocation11]  }
  0x3b   :  { %v167_v15 = vmul.f32 %v631_v7, %v599_v5  ;;  %v168_v16 = vmul.f32 %v632_v8, %v600_v6  ;;  %754 = vlog2.f32 %v631_v7  ;;  %v519_v20 = vunpack.c.l.bf16 %v965_v10  ;;  %v701_v48 = vld [vmem:[#allocation8 + $0x50] sm:$0xff]   ;;  %v702_v9 = vld [vmem:[#allocation8 + $0x58] sm:$0xff]   ;;  %s573_s4 = sshll.u32 %s877_s3, 4  ;;  %s574_s4 = int_to_ptr.vmem [resolvable:$true] %s573_s4 }
  0x3c   :  { %v521_v24 = vunpack.c.l.bf16 %v520_v14  ;;  %756 = vlog2.f32 %v632_v8  ;;  %v536_v27 = vmul.f32 0.5, %v516_v13  ;;  %v303_v33 = vmul.f32 %v599_v5, %v287_v17  ;;  %v708_v53 = vld [vmem:[#allocation8 + $0x10] sm:$0xff]   ;;  %v709_v14 = vld [vmem:[#allocation8 + $0x18] sm:$0xff]   ;;  %s830_s14 = scalar_lea.vmem %s574_s4, 128  ;;  %p835_p11 = scmp.lt.s32.totalorder %s574_s4, %s574_s4 }
  0x3d   :  { %v183_v21 = vadd.f32 %v663_v11, %v167_v15  ;;  %v184_v22 = vadd.f32 %v664_v12, %v168_v16  ;;  %v522_v26 = vmul.f32 %v519_v20, %v516_v13  ;;  %v304_v34 = vmul.f32 %v600_v6, %v288_v19  ;;  %p831_p10 = scmp.ne.s32.totalorder %s574_s4, %s830_s14  ;;  %p836_p12 = scmp.lt.s32.totalorder %s830_s14, %s830_s14 }
  0x3e   :  { %v635_v36 = vunpack.c.l.bf16 %v700_v25  ;;  %v636_v37 = vunpack.c.h.bf16 %v700_v25  ;;  %v667_v40 = vunpack.c.l.bf16 %v707_v29  ;;  %v668_v41 = vunpack.c.h.bf16 %v707_v29  ;;  %v703_v29 = vld [vmem:[#allocation8 + $0x60] sm:$0xff]  }
  0x3f   :  { %v200_v30 = vpack.c.bf16 %v184_v22, %v183_v21  ;;  %v255_v31 = vmul.f32 50.0, %v183_v21  ;;  %v256_v32 = vmul.f32 50.0, %v184_v22  ;;  %vm455_vm1 = vcmp.lt.s32.totalorder %v972_v23, 32  ;;  %p837_p13 = por %p836_p12, %p835_p11 }
  0x40   :  { %v169_v42 = vmul.f32 %v635_v36, %v603_v28  ;;  %v170_v43 = vmul.f32 %v636_v37, %v604_v35  ;;  %v976_v45 = vadd.f32 %v522_v26, %v521_v24  ;;  %v978_v46 = vmul.f32 %v536_v27, %v516_v13  ;;  %v696_v24 = vld [vmem:[#allocation10 + $0x20] sm:$0xff]  }
  0x41   :  { %724 = vmatpush3.bf16.msra.mxu0 %v200_v30  ;;  %v271_v38 = vmul.f32 %v255_v31, %v183_v21  ;;  %v272_v39 = vmul.f32 %v256_v32, %v184_v22  ;;  %v289_v47 = vmul.f32 0.5, %v603_v28  ;;  %758 = vlog2.f32 %v635_v36  ;;  %p838_p0 = pnand %p837_p13, %p831_p10 }
  0x42   :  { %725 = vmatprep.subr.bf16.mxu0 %v875_v0  ;;  %v185_v51 = vadd.f32 %v667_v40, %v169_v42  ;;  %v186_v52 = vadd.f32 %v668_v41, %v170_v43  ;;  %v290_v54 = vmul.f32 0.5, %v604_v35  ;;  %760 = vlog2.f32 %v636_v37 }
  0x43   :  { %v319_v49 = vsub.f32 %v271_v38, %v303_v33  ;;  %v320_v50 = vsub.f32 %v272_v39, %v304_v34  ;;  %v607_v55 = vunpack.c.l.bf16 %v694_v44  ;;  %v608_v56 = vunpack.c.h.bf16 %v694_v44  ;;  %v710_v39 = vld [vmem:[#allocation8 + $0x20] sm:$0xff]  }
  0x44   :  { %v201_v58 = vpack.c.bf16 %v186_v52, %v185_v51  ;;  %v257_v59 = vmul.f32 50.0, %v185_v51  ;;  %v258_v60 = vmul.f32 50.0, %v186_v52  ;;  %v639_v61 = vunpack.c.l.bf16 %v701_v48 }
  0x45   :  { %v755_v57 = vpop.eup %754  ;;  %v640_v1 = vunpack.c.h.bf16 %v701_v48  ;;  %v671_v2 = vunpack.c.l.bf16 %v708_v53  ;;  %v672_v3 = vunpack.c.h.bf16 %v708_v53  ;;  %762 = vlog2.f32 %v519_v20 }
  0x46   :  { %v336_v63 = vmul.f32 0.6931472, %v755_v57  ;;  %v757_v5 = vpop.eup %756  ;;  %726 = vmatpush3.bf16.msra.mxu0 %v201_v58  ;;  %v273_v6 = vmul.f32 %v257_v59, %v185_v51  ;;  %v305_v7 = vmul.f32 %v603_v28, %v289_v47  ;;  %v171_v8 = vmul.f32 %v639_v61, %v607_v55  ;;  %v697_v47 = vld [vmem:[#allocation10 + $0x28] sm:$0xff]  }
  0x47   :  { %v338_v10 = vmul.f32 0.6931472, %v757_v5  ;;  %727 = vmatprep.subr.bf16.mxu0 %v875_v0  ;;  %v172_v12 = vmul.f32 %v640_v1, %v608_v56  ;;  %v611_v13 = vunpack.c.l.bf16 %v695_v62  ;;  %v274_v15 = vmul.f32 %v258_v60, %v186_v52  ;;  %v704_v52 = vld [vmem:[#allocation8 + $0x68] sm:$0xff]   ;;  %v698_v5 = vld [vmem:[#allocation10 + $0x30] sm:$0xff]  }
  0x48   :  { %v367_v11 = vsub.f32 %v319_v49, %v336_v63  ;;  %v306_v16 = vmul.f32 %v604_v35, %v290_v54  ;;  %v187_v17 = vadd.f32 %v671_v2, %v171_v8  ;;  %v612_v18 = vunpack.c.h.bf16 %v695_v62  ;;  %v711_v62 = vld [vmem:[#allocation8 + $0x28] sm:$0xff]  }
  0x49   :  { %v368_v19 = vsub.f32 %v320_v50, %v338_v10  ;;  %v188_v22 = vadd.f32 %v672_v3, %v172_v12  ;;  %v643_v20 = vunpack.c.l.bf16 %v702_v9  ;;  %v321_v25 = vsub.f32 %v273_v6, %v305_v7  ;;  %v705_v10 = vld [vmem:[#allocation8 + $0x70] sm:$0xff]  }
  0x4a   :  { %v383_v21 = vadd.f32 -2.3025851, %v367_v11  ;;  %v644_v26 = vunpack.c.h.bf16 %v702_v9  ;;  %v675_v27 = vunpack.c.l.bf16 %v709_v14  ;;  %v676_v28 = vunpack.c.h.bf16 %v709_v14 }
  0x4b   :  { %v759_v30 = vpop.eup %758  ;;  %v384_v31 = vadd.f32 -2.3025851, %v368_v19  ;;  %v202_v33 = vpack.c.bf16 %v188_v22, %v187_v17  ;;  %v173_v34 = vmul.f32 %v643_v20, %v611_v13  ;;  %v322_v35 = vsub.f32 %v274_v15, %v306_v16  ;;  %v712_v15 = vld [vmem:[#allocation8 + $0x30] sm:$0xff]  }
  0x4c   :  { %v472_v32 = vsel %vm455_vm1, %v383_v21, 0.0  ;;  %v340_v36 = vmul.f32 0.6931472, %v759_v30  ;;  %v174_v37 = vmul.f32 %v644_v26, %v612_v18  ;;  %v615_v38 = vunpack.c.l.bf16 %v696_v24  ;;  %v761_v40 = vpop.eup %760  ;;  %v699_v21 = vld [vmem:[#allocation10 + $0x38] sm:$0xff]  }
  0x4d   :  { %v473_v41 = vsel %vm455_vm1, %v384_v31, 0.0  ;;  %728 = vmatpush3.bf16.msra.mxu0 %v202_v33  ;;  %v189_v42 = vadd.f32 %v675_v27, %v173_v34  ;;  %v616_v43 = vunpack.c.h.bf16 %v696_v24  ;;  %v647_v44 = vunpack.c.l.bf16 %v703_v29  ;;  %v706_v26 = vld [vmem:[#allocation8 + $0x78] sm:$0xff]  }
  0x4e   :  { %v489_v48 = vadd.f32 %v473_v41, %v472_v32  ;;  %v534_v49 = vmul.f32 50.0, %v976_v45  ;;  %v342_v50 = vmul.f32 0.6931472, %v761_v40  ;;  %v369_v51 = vsub.f32 %v321_v25, %v340_v36  ;;  %729 = vmatprep.subr.bf16.mxu0 %v875_v0  ;;  %v713_v31 = vld [vmem:[#allocation8 + $0x38] sm:$0xff]  }
  0x4f   :  { %v190_v53 = vadd.f32 %v676_v28, %v174_v37  ;;  %v648_v54 = vunpack.c.h.bf16 %v703_v29  ;;  %v679_v55 = vunpack.c.l.bf16 %v710_v39  ;;  %v680_v56 = vunpack.c.h.bf16 %v710_v39  ;;  %v987_v57 = vpop.eup %762 }
  0x50   :  { %v370_v58 = vsub.f32 %v322_v35, %v342_v50  ;;  %v385_v59 = vadd.f32 -2.3025851, %v369_v51  ;;  %v175_v60 = vmul.f32 %v647_v44, %v615_v38  ;;  %v619_v61 = vunpack.c.l.bf16 %v697_v47 }
  0x51   :  { %v203_v63 = vpack.c.bf16 %v190_v53, %v189_v42  ;;  %v176_v1 = vmul.f32 %v648_v54, %v616_v43  ;;  %v620_v2 = vunpack.c.h.bf16 %v697_v47  ;;  %v651_v3 = vunpack.c.l.bf16 %v704_v52 }
  0x52   :  { %v386_v6 = vadd.f32 -2.3025851, %v370_v58  ;;  %v474_v7 = vsel %vm455_vm1, %v385_v59, 0.0  ;;  %v191_v8 = vadd.f32 %v679_v55, %v175_v60  ;;  %v652_v9 = vunpack.c.h.bf16 %v704_v52 }
  0x53   :  { %v490_v11 = vadd.f32 %v489_v48, %v474_v7  ;;  %730 = vmatpush3.bf16.msra.mxu0 %v203_v63  ;;  %v192_v12 = vadd.f32 %v680_v56, %v176_v1  ;;  %v683_v13 = vunpack.c.l.bf16 %v711_v62  ;;  %v684_v14 = vunpack.c.h.bf16 %v711_v62 }
  0x54   :  { %v475_v16 = vsel %vm455_vm1, %v386_v6, 0.0  ;;  %731 = vmatprep.subr.bf16.mxu0 %v875_v0  ;;  %v177_v17 = vmul.f32 %v651_v3, %v619_v61  ;;  %v178_v18 = vmul.f32 %v652_v9, %v620_v2  ;;  %v623_v19 = vunpack.c.l.bf16 %v698_v5  ;;  %v199_v2 = vld [vmem:[#allocation4] sm:$0xf] }
  0x55   :  { %v491_v22 = vadd.f32 %v490_v11, %v475_v16  ;;  %v204_v20 = vpack.c.bf16 %v192_v12, %v191_v8  ;;  %v624_v24 = vunpack.c.h.bf16 %v698_v5  ;;  %v655_v25 = vunpack.c.l.bf16 %v705_v10 }
  0x56   :  { %v193_v27 = vadd.f32 %v683_v13, %v177_v17  ;;  %v194_v28 = vadd.f32 %v684_v14, %v178_v18  ;;  %v656_v29 = vunpack.c.h.bf16 %v705_v10  ;;  %v687_v30 = vunpack.c.l.bf16 %v712_v15 }
  0x57   :  { %v504_v32 = vrot.slane %v491_v22, 4  ;;  %732 = vmatpush3.bf16.msra.mxu0 %v204_v20  ;;  %v688_v33 = vunpack.c.h.bf16 %v712_v15  ;;  %v179_v34 = vmul.f32 %v655_v25, %v623_v19  ;;  %v627_v35 = vunpack.c.l.bf16 %v699_v21 }
  0x58   :  { %733 = vmatprep.subr.bf16.mxu0 %v875_v0  ;;  %v205_v36 = vpack.c.bf16 %v194_v28, %v193_v27  ;;  %v180_v37 = vmul.f32 %v656_v29, %v624_v24  ;;  %v628_v38 = vunpack.c.h.bf16 %v699_v21  ;;  %v659_v39 = vunpack.c.l.bf16 %v706_v26 }
  0x59   :  { %v505_v40 = vadd.f32 %v504_v32, %v491_v22  ;;  %v195_v41 = vadd.f32 %v687_v30, %v179_v34  ;;  %v660_v42 = vunpack.c.h.bf16 %v706_v26  ;;  %v691_v43 = vunpack.c.l.bf16 %v713_v31 }
  0x5a   :  { %v535_v44 = vmul.f32 %v534_v49, %v976_v45  ;;  %v196_v47 = vadd.f32 %v688_v33, %v180_v37  ;;  %v692_v48 = vunpack.c.h.bf16 %v713_v31  ;;  %v181_v50 = vmul.f32 %v659_v39, %v627_v35  ;;  %v488_v49 = vld [vmem:[#allocation3] sm:$0x1] }
  0x5b   :  { %v506_v51 = vrot.slane %v505_v40, 2  ;;  %734 = vmatpush3.bf16.msra.mxu0 %v205_v36  ;;  %v182_v52 = vmul.f32 %v660_v42, %v628_v38  ;;  %v540_v59 = vmul.f32 0.6931472, %v987_v57  ;;  %vm554_vm2 = vcmask 1040384  }
  0x5c   :  { %735 = vmatprep.subr.bf16.mxu0 %v875_v0  ;;  %v206_v53 = vpack.c.bf16 %v196_v47, %v195_v41  ;;  %v197_v54 = vadd.f32 %v691_v43, %v181_v50  ;;  %v538_v58 = vsub.f32 %v535_v44, %v978_v46  ;;  %v526_v14 = vshrl.u32 %v434_v4, 7 }
  0x5d   :  { %v507_v55 = vadd.f32 %v506_v51, %v505_v40  ;;  %v198_v56 = vadd.f32 %v692_v48, %v182_v52 }
  0x5e   :  { %v541_v63 = vsub.f32 %v538_v58, %v540_v59  ;;  %v527_v15 = vsub.s32 0, %v526_v14 }
  0x5f   :  { %v508_v60 = vrot.slane %v507_v55, 1  ;;  %736 = vmatpush3.bf16.msra.mxu0 %v206_v53  ;;  %v207_v61 = vpack.c.bf16 %v198_v56, %v197_v54 }
  0x60   :  { %737 = vmatprep.subr.bf16.mxu0 %v875_v0  ;;  %v542_v3 = vadd.f32 -2.3025851, %v541_v63  ;;  %v528_v23 = vrot.slane %v976_v45, %v527_v15 }
  0x61   :  { %v509_v62 = vadd.f32 %v508_v60, %v507_v55 }
  0x62   :  { %v549_v5 = vsel %vm455_vm1, %v542_v3, 0.0 }
  0x63   :  { %v510_v1 = vadd.f32 %v509_v62, %v488_v49  ;;  %738 = vmatpush3.bf16.msra.mxu0 %v207_v61 }
  0x65   :  { %511 = vst [vmem:[#allocation3] sm:$0x1] %v510_v1 }
  0x66   :  { %740 = vmatmul.mubr.bf16.vlgmr.msra.gmra.mrb[0].mxu0 %v199_v2 }
  0x6c   :  { %v550_v46 = vld [vmem:[#allocation3] sm:$0x1] }
  0x6d   :  { %v551_v6 = vadd.f32 %v550_v46, %v549_v5 }
  0x6f   :  { %552 = vst [vmem:[#allocation3] sm:$0x1] %v551_v6 }
  0x76   :  { %v553_v57 = vld [vmem:[#allocation3] sm:$0x1] }
  0x77   :  { %v555_v7 = vsel %vm554_vm2, %v553_v57, 0.0 }
  0x78   :  { %556 = vadd.xlane.f32.xlu0 %v555_v7 }
 0x105   :  { %v557_v8 = vpop.xlane.xlu0 %556 }
 0x106   :  { %v558_v0 = vrot.slane %v557_v8, 4 }
 0x108   :  { %v559_v9 = vadd.f32 %v558_v0, %v557_v8 }
 0x10a   :  { %v560_v10 = vrot.slane %v559_v9, 2 }
 0x10c   :  { %v561_v11 = vadd.f32 %v560_v10, %v559_v9 }
 0x10e   :  { %v562_v12 = vrot.slane %v561_v11, 1 }
 0x110   :  { %v563_v13 = vadd.f32 %v562_v12, %v561_v11 }
 0x112   :  { %743 = vpush %v563_v13 }
 0x139   :  { %v243_v16 = vpop.f32.mrb[0].mxu0 }
 0x13a   :  { %v529_v17 = vadd.f32 %v528_v23, %v243_v16  ;;  %v741_v18 = vpop.f32.mrb[1].mxu0 }
 0x13b   :  { %v246_v19 = vpop.f32.mrb[2].mxu0 }
 0x13c   :  { %530 = vst [vmem:[#allocation11] sm:$0xff] %v529_v17  ;;  %v742_v21 = vpop.f32.mrb[3].mxu0 }
 0x13d   :  { %841 = shalt.err (!%p838_p0)
}
 0x13e   :  { %s842_s17 = scalar_lea.hbm %s1033_s5, 128 }
 0x13f   :  { %p843_p1 = scmp.ne.s32.totalorder %s1033_s5, %s842_s17  ;;  %p846_p2 = scmp.lt.u32.totalorder %s842_s17, %s1033_s5 }
 0x141   :  { %p848_p3 = pnand %p846_p2, %p843_p1 }
 0x143   :  { %851 = shalt.err (!%p848_p3)
}
 0x144   :  { %576 = dma.vmem_to_hbm [thread:$0]  %s574_s4, 128, %s1033_s5, [#allocation6]  }
 0x145   :  { %s744_s23 = spop %743  ;;  %s852_s26 = scalar_lea.hbm %s1034_s6, 16 }
 0x146   :  { %566 = sst [smem:[#allocation12]] %s744_s23  ;;  %p853_p4 = scmp.ne.s32.totalorder %s1034_s6, %s852_s26 }
 0x147   :  { %p856_p5 = scmp.lt.u32.totalorder %s852_s26, %s1034_s6 }
 0x149   :  { %p858_p6 = pnand %p856_p5, %p853_p4 }
 0x14b   :  { %861 = shalt.err (!%p858_p6)
}
 0x14c   :  { %s878_s9 = smov [#allocation12]  }
 0x14d   :  { %584 = dma.smem_to_hbm %s878_s9, 16, %s1034_s6, [#allocation7]  }
 0x14e   :  { %866 = dma.done.wait [#allocation6], 128  }
 0x14f   :  { %867 = vsyncadd [#allocation6], 4294967168 }
 0x150   :  { %868 = dma.done.wait [#allocation7], 16  }
 0x151   :  { %869 = vsyncadd [#allocation7], 4294967280 }
 0x152   :  { %591 = sfence }
 0x153   :  { %592 = vsyncpa [#allocation5], 1 }
 0x154   :  { %593 = vsyncpa [#allocation9], 1 }
 0x155   :  { %594 = vsyncpa [#allocation6], 1 }
 0x156   :  { %595 = vsyncpa [#allocation7], 1 }

</bundles_post_ra>
